<compile_context>
chip_gen: v5e
topology: v5e:2x2
jax: 0.10.0
libtpu: 0.0.40
codegen_flags: <defaults>
</compile_context>

<pallas_src>
import math
from functools import partial

import jax
import jax.numpy as jnp
from jax import lax
from jax.experimental import pallas as pl
from jax.experimental.pallas import tpu as pltpu


# ----------------------------------------------------------------------------
# Kernel
# ----------------------------------------------------------------------------
def _diar_kernel(x_ref, w_ref, b_ref, o_ref, *, tn, nj):
    """One (tb, tn) output tile:  out = (x_cols - mean) / std.

    x_ref: (tb, n)     full feature rows of this batch tile
    w_ref: (n, 2*tn)   [Wm^T cols of block j | Ws^T cols of block j]
    b_ref: (1, 2*tn)   [bm block j | bs block j]
    o_ref: (tb, tn)
    """
    x = x_ref[...]
    # Single fused MXU pass for both heads, f32 accumulation.
    h = jnp.dot(x, w_ref[...], preferred_element_type=jnp.float32) + b_ref[...]
    mean = h[:, :tn]
    std = h[:, tn:]
    if nj == 1:
        xc = x
    else:
        j = pl.program_id(1)
        xc = lax.dynamic_slice_in_dim(x, j * tn, tn, axis=1)  # lane-aligned (tn % 128 == 0)
    o_ref[...] = ((xc - mean) / std).astype(o_ref.dtype)


# ----------------------------------------------------------------------------
# Device-aware tile planning (runs once per shape, plain Python)
# ----------------------------------------------------------------------------
def plan_tiles(batch, n):
    """Pick (tb, tn, vmem_limit_bytes) for the current TPU generation."""
    kind = jax.devices()[0].device_kind.lower()
    is_v7 = "v7" in kind
    budget = (44 if is_v7 else 96) << 20      # usable VMEM target for this kernel
    cap = (56 if is_v7 else 112) << 20        # never request more than this
    bp = -(-batch // 8) * 8                   # batch padded to a sublane multiple

    # Column tile over output features. Fused weight slab is (n, 2*tn) f32.
    if (8 * n * n <= budget // 2) or (n % 128 != 0):
        tn = n                                # whole fused weight resident, single-buffered
        w_bytes = 8 * n * (n + 1)             # weights + bias, 1 buffer
        # TODO(synk): a huge n that is not a multiple of 128 cannot be column-tiled here.
    else:
        tn = min(n, max(128, ((budget // 2) // (16 * n)) // 128 * 128))
        while n % tn:                         # n % 128 == 0, so this terminates at >= 128
            tn -= 128
        w_bytes = 2 * 8 * (n + 1) * tn        # double-buffered changing weight slabs

    # Row tile: double-buffered x (tb, n) input and (tb, tn) output, f32.
    per_row = 8 * (n + tn)
    tb_cap = max(8, min((budget - w_bytes) // per_row, 2048))
    if is_v7 and tn == n and bp >= 16:
        tb_cap = min(tb_cap, bp // 2)         # keep >= 2 grid steps -> both v7x TCs busy
    tb = max(8, min(bp, (tb_cap // 8) * 8))
    while bp % tb:                            # tb must divide the padded batch
        tb -= 8

    need = w_bytes + per_row * tb
    vmem_limit = int(min(cap, max(32 << 20, need + (4 << 20))))
    return tb, tn, vmem_limit


# ----------------------------------------------------------------------------
# One-time parameter re-layout (hoisted out of the per-call path)
# ----------------------------------------------------------------------------
def prepare_dense_iar_params(w_mean, b_mean, w_std, b_std, tn):
    """PyTorch (out, in) Linear weights -> fused, column-block-interleaved layout.

    Column block j of the returned (n, 2n) weight holds
    [Wm^T[:, j*tn:(j+1)*tn] | Ws^T[:, j*tn:(j+1)*tn]]; biases are packed the
    same way.  With tn == n this is simply [Wm^T | Ws^T].
    """
    n = w_mean.shape[0]
    assert n % tn == 0, (n, tn)
    nj = n // tn
    wm_t = jnp.asarray(w_mean, jnp.float32).T.reshape(n, nj, 1, tn)
    ws_t = jnp.asarray(w_std, jnp.float32).T.reshape(n, nj, 1, tn)
    wcat = jnp.concatenate([wm_t, ws_t], axis=2).reshape(n, 2 * n)
    bm = jnp.asarray(b_mean, jnp.float32).reshape(nj, 1, tn)
    bs = jnp.asarray(b_std, jnp.float32).reshape(nj, 1, tn)
    bcat = jnp.concatenate([bm, bs], axis=1).reshape(1, 2 * n)
    return wcat, bcat


# ----------------------------------------------------------------------------
# Fused forward pass
# ----------------------------------------------------------------------------
@partial(jax.jit, static_argnames=("tb", "tn", "vmem_limit"))
def dense_inverse_autoregressive(x, wcat, bcat, *, tb, tn, vmem_limit):
    """x: (B, n) f32.  wcat/bcat: packed params from prepare_dense_iar_params."""
    b, n = x.shape
    nj = n // tn
    bp = -(-b // 8) * 8
    bp = -(-bp // tb) * tb
    # 'edge' padding keeps the (discarded) padded rows finite -- no 0/0.
    xp = x if bp == b else jnp.pad(x, ((0, bp - b), (0, 0)), mode="edge")

    # Grid-invariant weight/bias blocks: single buffer (halves their VMEM use).
    w_kw = {"pipeline_mode": pl.Buffered(1)} if nj == 1 else {}

    out = pl.pallas_call(
        partial(_diar_kernel, tn=tn, nj=nj),
        out_shape=jax.ShapeDtypeStruct((bp, n), x.dtype),
        grid=(bp // tb, nj),
        in_specs=[
            pl.BlockSpec((tb, n), lambda i, j: (i, 0)),              # batch rows (full features)
            pl.BlockSpec((n, 2 * tn), lambda i, j: (0, j), **w_kw),  # fused weight slab
            pl.BlockSpec((1, 2 * tn), lambda i, j: (0, j), **w_kw),  # fused bias slab
        ],
        out_specs=pl.BlockSpec((tb, tn), lambda i, j: (i, j)),
        compiler_params=pltpu.CompilerParams(
            dimension_semantics=("parallel", "parallel"),
            vmem_limit_bytes=vmem_limit,
        ),
    )(xp, wcat, bcat)
    return out[:b]


# ----------------------------------------------------------------------------
# Test scaffolding
# ----------------------------------------------------------------------------
def init_dense_iar_params(key, n):
    """Parameters of the two Dense(n, n) sub-modules.

    Weights: glorot_uniform with gain=1 (non_linearity=None), PyTorch (out, in)
    layout.  The module initializes biases to 0; the test uses small nonzero
    biases so the bias-add path is actually exercised (the kernel supports any
    bias values)."""
    km, ks, kbm, kbs = jax.random.split(key, 4)
    bound = math.sqrt(6.0 / (n + n))
    w_mean = jax.random.uniform(km, (n, n), jnp.float32, -bound, bound)
    w_std = jax.random.uniform(ks, (n, n), jnp.float32, -bound, bound)
    b_mean = 0.1 * jax.random.normal(kbm, (n,), jnp.float32)
    b_std = 0.1 * jax.random.normal(kbs, (n,), jnp.float32)
    return w_mean, b_mean, w_std, b_std


def _reference(x, w_mean, b_mean, w_std, b_std):
    """Pure-JAX reference mirroring the PyTorch module (nn.Linear = x @ W^T + b)."""
    hi = lax.Precision.HIGHEST
    mean = jnp.dot(x, w_mean.T, precision=hi) + b_mean
    std = jnp.dot(x, w_std.T, precision=hi) + b_std
    return (x - mean) / std, mean, std


def _check(out, x, w_mean, b_mean, w_std, b_std):
    assert out.shape == x.shape, out.shape
    ref, _, std_ref = _reference(x, w_mean, b_mean, w_std, b_std)
    # The final division amplifies matmul rounding by ~1/|std(x)|, so compare
    # with a condition-aware per-element tolerance instead of a flat rtol.
    err = jnp.abs(out - ref)
    tol = 5e-4 * (1.0 + jnp.abs(ref)) * (1.0 + 1.0 / jnp.abs(std_ref))
    assert bool(jnp.all(err <= tol)), float(jnp.max(err / tol))


if __name__ == "__main__":
    key = jax.random.PRNGKey(0)

    # --- Case 1: small module-typical shape, auto-planned tiles (nj == 1,
    #     single-buffered fused weights, batch padded 2 -> 8).
    k1, k2, key = jax.random.split(key, 3)
    batch, n = 2, 32
    x = jax.random.normal(k1, (batch, n), jnp.float32)
    params = init_dense_iar_params(k2, n)
    tb, tn, vmem_limit = plan_tiles(batch, n)
    wcat, bcat = prepare_dense_iar_params(*params, tn=tn)
    out = jax.block_until_ready(
        dense_inverse_autoregressive(x, wcat, bcat, tb=tb, tn=tn, vmem_limit=vmem_limit)
    )
    _check(out, x, *params)

    # --- Case 2: exercise the multi-step row grid, batch padding up to a tile
    #     multiple (40 -> 48), and the column-tiled weight path (nj = 2).
    k3, k4, key = jax.random.split(key, 3)
    batch2, n2, tn2, tb2 = 40, 256, 128, 16
    x2 = jax.random.normal(k3, (batch2, n2), jnp.float32)
    params2 = init_dense_iar_params(k4, n2)
    wcat2, bcat2 = prepare_dense_iar_params(*params2, tn=tn2)
    out2 = jax.block_until_ready(
        dense_inverse_autoregressive(
            x2, wcat2, bcat2, tb=tb2, tn=tn2, vmem_limit=48 * 1024 * 1024
        )
    )
    _check(out2, x2, *params2)

    print("KERNEL_OK")
</pallas_src>

<mosaic_0001>
module attributes {stable_mosaic.version = 11 : i64} {
  func.func @_diar_kernel(%arg0: i32, %arg1: i32, %arg2: memref<8x32xf32, #tpu.memory_space<vmem>>, %arg3: memref<32x64xf32, #tpu.memory_space<vmem>>, %arg4: memref<1x64xf32, #tpu.memory_space<vmem>>, %arg5: memref<8x32xf32, #tpu.memory_space<vmem>>) attributes {dimension_semantics = [#tpu.dimension_semantics<parallel>, #tpu.dimension_semantics<parallel>], iteration_bounds = array<i64: 1, 1>, scalar_prefetch = 0 : i64, scratch_operands = 0 : i64, tpu.core_type = #tpu.core_type<tc>, window_params = [{transform_indices = @transform_0, window_bounds = array<i64: 8, 32>}, {pipeline_mode = #tpu.pipeline_mode<synchronous>, transform_indices = @transform_1, window_bounds = array<i64: 32, 64>}, {pipeline_mode = #tpu.pipeline_mode<synchronous>, transform_indices = @transform_2, window_bounds = array<i64: 1, 64>}, {transform_indices = @transform_3, window_bounds = array<i64: 8, 32>}]} {
    %c0 = arith.constant 0 : index
    %c0_0 = arith.constant 0 : index
    %0 = vector.load %arg2[%c0, %c0_0] : memref<8x32xf32, #tpu.memory_space<vmem>>, vector<8x32xf32>
    %c0_1 = arith.constant 0 : index
    %c0_2 = arith.constant 0 : index
    %1 = vector.load %arg3[%c0_1, %c0_2] : memref<32x64xf32, #tpu.memory_space<vmem>>, vector<32x64xf32>
    %cst = arith.constant dense<0.000000e+00> : vector<8x64xf32>
    %2 = tpu.matmul %0, %1, %cst {dimension_numbers = #tpu.dot_dimension_numbers<[1], [0], [0], [1], [0, 0, 1, 1], [], []>} : vector<8x32xf32>, vector<32x64xf32>, vector<8x64xf32> -> vector<8x64xf32>
    %c0_3 = arith.constant 0 : index
    %c0_4 = arith.constant 0 : index
    %3 = vector.load %arg4[%c0_3, %c0_4] : memref<1x64xf32, #tpu.memory_space<vmem>>, vector<1x64xf32>
    %4 = vector.broadcast %3 : vector<1x64xf32> to vector<8x64xf32>
    %5 = arith.addf %2, %4 : vector<8x64xf32>
    %6 = vector.extract_strided_slice %5 {offsets = [0, 0], sizes = [8, 32], strides = [1, 1]} : vector<8x64xf32> to vector<8x32xf32>
    %7 = vector.extract_strided_slice %5 {offsets = [0, 32], sizes = [8, 32], strides = [1, 1]} : vector<8x64xf32> to vector<8x32xf32>
    %8 = arith.subf %0, %6 : vector<8x32xf32>
    %9 = arith.divf %8, %7 : vector<8x32xf32>
    %c0_5 = arith.constant 0 : index
    %c0_6 = arith.constant 0 : index
    %10 = vector.load %arg5[%c0_5, %c0_6] : memref<8x32xf32, #tpu.memory_space<vmem>>, vector<8x32xf32>
    tpu.vector_store %arg5[%c0_5, %c0_6], %9 {strides = array<i32>} : memref<8x32xf32, #tpu.memory_space<vmem>>, vector<8x32xf32>,
    return
  }
  func.func @transform_0(%arg0: i32, %arg1: i32) -> (i32, i32) {
    %c0_i32 = arith.constant 0 : i32
    %c0_i32_0 = arith.constant 0 : i32
    return %arg0, %c0_i32 : i32, i32
  }
  func.func @transform_1(%arg0: i32, %arg1: i32) -> (i32, i32) {
    %c0_i32 = arith.constant 0 : i32
    %c0_i32_0 = arith.constant 0 : i32
    return %c0_i32, %arg1 : i32, i32
  }
  func.func @transform_2(%arg0: i32, %arg1: i32) -> (i32, i32) {
    %c0_i32 = arith.constant 0 : i32
    %c0_i32_0 = arith.constant 0 : i32
    return %c0_i32, %arg1 : i32, i32
  }
  func.func @transform_3(%arg0: i32, %arg1: i32) -> (i32, i32) {
    %c0_i32 = arith.constant 0 : i32
    return %arg0, %arg1 : i32, i32
  }
}

</mosaic_0001>

<bundles_post_ra>
// kernel: dense_inverse_autoregressive.1
= control target key start
LH: loop header
LB: loop body
LE: loop exit
PB: predicated region body
PF: predicated region fallthrough
CT: control target
= control target key end

     0   :  { %8 = vsyncpa [#allocation3], 0  ;;  %s123_s15 = smov [#allocation2]   ;;  %s124_s17 = smov 128   ;;  %s161_s0 = inlined_call_operand.vmem [shape: f32[8,32], index: 0, kind: input, shape index: {}]   ;;  %s162_s1 = inlined_call_operand.hbm [shape: f32[32,64], index: 1, kind: input, shape index: {}]   ;;  %s163_s2 = inlined_call_operand.vmem [shape: f32[1,64], index: 2, kind: input, shape index: {}]   ;;  %s164_s3 = inlined_call_operand.vmem [shape: f32[8,32], index: 3, kind: output, shape index: {}]  }
   0x1   :  { %s15_s14 = sshll.u32 %s162_s1, 4  ;;  %s17_s16 = sshll.u32 %s123_s15, 4  ;;  %s16_s14 = int_to_ptr.hbm [resolvable:$true] %s15_s14  ;;  %s18_s16 = int_to_ptr.vmem [resolvable:$true] %s17_s16 }
   0x2   :  { %s125_s18 = smov 8  }
   0x3   :  { %23 = dma.hbm_to_vmem [thread:$0]  %s16_s14, 512, %s18_s16, [#allocation3], %s124_s17, %s124_s17, %s125_s18  }
   0x4   :  { %121 = dma.done.wait [#allocation3], 512  }
   0x5   :  { %122 = vsyncadd [#allocation3], 4294966784  ;;  %v34_v0 = vld [vmem:[#allocation2 + $0x18] sm:$0xff]  ;;  %v33_v1 = vld [vmem:[#allocation2 + $0x10] sm:$0xff]  ;;  %vm39_vm0 = vcmask 261120   ;;  %s126_s22 = smov 96  }
   0x6   :  { %55 = vmatpush.msra.mxu0 %v34_v0  ;;  %v32_v2 = vld [vmem:[#allocation2 + $0x8] sm:$0xff]  ;;  %v31_v3 = vld [vmem:[#allocation2] sm:$0xff] }
   0x7   :  { %v30_v4 = vld [vmem:[%s161_s0] sm:$0xff] }
   0x8   :  { %56 = vmatpush.msra.mxu0 %v33_v1  ;;  %v94_v5 = vld [vmem:[%s163_s2] ss:$0 sm:$0xff] }
   0xa   :  { %57 = vmatpush.msra.mxu0 %v32_v2 }
   0xc   :  { %58 = vmatpush.msra.mxu0 %v31_v3 }
   0xd   :  { %89 = vmatmul.msk.f32.vlgmr.msra.gmra.mxu0 %vm39_vm0, %v30_v4 }
  0x8a   :  { %v60_v6 = vpop.f32.mrf.mxu0 }
  0x8b   :  { %v61_v7 = vadd.f32 %v94_v5, %v60_v6 }
  0x8d   :  { %65 = vrot.lane.b32.xlu0 %v61_v7, %s126_s22  ;;  %v63_v17 = vsub.f32 %v30_v4, %v61_v7 }
  0xff   :  { %v66_v8 = vpop.permute.xlu0 %65 }
 0x100   :  { %95 = vrcp.f32 %v66_v8  ;;  %v79_v12 = vand.u32 2147483648, %v66_v8  ;;  %v77_v14 = vand.u32 2147483647, %v66_v8  ;;  %vm73_vm2 = vweird.f32 %v66_v8 }
 0x102   :  { %v80_v16 = vor.u32 1.1754944e-38, %v79_v12  ;;  %vm78_vm4 = vcmp.eq.f32.partialorder %v77_v14, 8.507059e+37 }
 0x106   :  { %v96_v9 = vpop.eup %95 }
 0x107   :  { %v69_v10 = vmul.f32 %v96_v9, %v66_v8  ;;  %vm74_vm1 = vweird.f32 %v96_v9 }
 0x108   :  { %vm75_vm3 = vmor %vm73_vm2, %vm74_vm1 }
 0x109   :  { %v70_v11 = vsub.f32 1.0, %v69_v10 }
 0x10b   :  { %v71_v13 = vmul.f32 %v96_v9, %v70_v11 }
 0x10d   :  { %v72_v15 = vadd.f32 %v96_v9, %v71_v13 }
 0x10f   :  { %v76_v18 = vsel %vm75_vm3, %v96_v9, %v72_v15 }
 0x110   :  { %v81_v19 = vsel %vm78_vm4, %v80_v16, %v76_v18 }
 0x111   :  { %v82_v20 = vmul.f32 %v81_v19, %v63_v17 }
 0x113   :  { %83 = vst.msk [vmem:[%s164_s3] sm:$0xff] %vm39_vm0, %v82_v20 }
 0x114   :  { %88 = vsyncpa [#allocation3], 1 }

</bundles_post_ra>
